<compile_context>
chip_gen: v7x
topology: tpu7x:2x2x1
jax: 0.10.0
libtpu: 0.0.40
codegen_flags: <defaults>
</compile_context>

<pallas_src>
import functools

import jax
import jax.numpy as jnp
from jax import lax
from jax.experimental import pallas as pl
from jax.experimental.pallas import tpu as pltpu

_NEG_LARGE = -1e30  # masked-class fill value: exp underflows to 0 in f32


def _ce_kernel(logits_ref, picked_ref, loss_ref, m_sc, s_sc, *,
               num_classes, mask_classes):
    """Online logsumexp over class tiles; loss = logsumexp(row) - logit[target].

    logits_ref : VMEM (TB, TC)  input dtype (bf16/f32), upcast to f32 in-kernel
    picked_ref : VMEM (TB, 1)   f32 target logit per row (gathered in wrapper)
    loss_ref   : VMEM (TB, 1)   f32 per-row loss (written on the last class tile)
    m_sc, s_sc : VMEM (TB, 1)   f32 running max / running exp-sum
    """
    ci = pl.program_id(1)

    @pl.when(ci == 0)
    def _():
        m_sc[...] = jnp.full_like(m_sc, -jnp.inf)
        s_sc[...] = jnp.zeros_like(s_sc)

    logits = logits_ref[...].astype(jnp.float32)          # (TB, TC) f32
    tb, tc = logits.shape

    if mask_classes:
        # Ragged last class tile: columns >= num_classes contribute exp(.) == 0.
        # One iota + one compare + one select; only emitted when C % TC != 0.
        lane = lax.broadcasted_iota(jnp.int32, (tb, tc), 1)
        logits = jnp.where(lane < (num_classes - ci * tc), logits, _NEG_LARGE)

    # Online logsumexp update.
    m_old = m_sc[...]
    m_new = jnp.maximum(m_old, jnp.max(logits, axis=-1, keepdims=True))
    alpha = jnp.exp(m_old - m_new)                        # 0 on first tile (exp(-inf))
    s_sc[...] = alpha * s_sc[...] + jnp.sum(
        jnp.exp(logits - m_new), axis=-1, keepdims=True)
    m_sc[...] = m_new

    @pl.when(ci == pl.num_programs(1) - 1)
    def _():
        # per-row loss = logsumexp(row) - logit[target]
        loss_ref[...] = m_sc[...] + jnp.log(s_sc[...]) - picked_ref[...]


def _round_up(x, m):
    return (x + m - 1) // m * m


@functools.partial(jax.jit, static_argnames=("tile_b", "tile_c"))
def act_cross_entropy_loss(inputs, targets, *, tile_b=256, tile_c=None):
    """JAX wrapper matching ActCrossEntropyLoss.forward.

    inputs  : (batch, num_classes) float32 or bfloat16 unnormalized logits
    targets : (batch, window) integer class indices
    returns : scalar float32 mean cross-entropy loss (ignore_index=-100 excluded)
    """
    B, C = inputs.shape
    itemsize = inputs.dtype.itemsize
    tgt0 = targets[:, 0].astype(jnp.int32)

    # Gather the target logit per row in the wrapper (tiny vs the B*C stream).
    # ignore_index rows (-100) are clamped to 0 and excluded from the mean below.
    safe_tgt = jnp.clip(tgt0, 0, C - 1)
    picked = jnp.take_along_axis(
        inputs, safe_tgt[:, None], axis=1).astype(jnp.float32)      # (B, 1)

    # Batch tile: >= 2 batch tiles whenever B > 8 so v7x's 2 TCs both get work.
    TB = max(8, min(tile_b, _round_up(pl.cdiv(B, 2), 8)))
    # Class tile: ~8 MiB logits block (amortizes per-grid-step overhead), capped
    # at the (128-rounded) class count.
    if tile_c is None:
        tile_c = max(512, ((8 * 1024 * 1024) // (TB * itemsize)) // 128 * 128)
    TC = min(tile_c, _round_up(C, 128))

    grid = (pl.cdiv(B, TB), pl.cdiv(C, TC))
    mask_classes = (C % TC) != 0

    kernel = functools.partial(_ce_kernel, num_classes=C, mask_classes=mask_classes)

    per_row = pl.pallas_call(
        kernel,
        out_shape=jax.ShapeDtypeStruct((B, 1), jnp.float32),
        grid_spec=pltpu.PrefetchScalarGridSpec(
            num_scalar_prefetch=0,
            grid=grid,
            in_specs=[
                pl.BlockSpec((TB, TC), lambda bi, ci: (bi, ci)),    # logits tile
                pl.BlockSpec((TB, 1), lambda bi, ci: (bi, 0)),      # picked target logit
            ],
            out_specs=pl.BlockSpec((TB, 1), lambda bi, ci: (bi, 0)),  # resident over class axis
            scratch_shapes=[
                pltpu.VMEM((TB, 1), jnp.float32),   # running max
                pltpu.VMEM((TB, 1), jnp.float32),   # running exp-sum
            ],
        ),
        compiler_params=pltpu.CompilerParams(
            dimension_semantics=("parallel", "arbitrary"),
            # 2 x ~8 MiB double-buffered logits + small extras; safe on v7x (64 MiB).
            vmem_limit_bytes=48 * 1024 * 1024,
        ),
        cost_estimate=pl.CostEstimate(
            flops=6 * B * C,
            transcendentals=B * C,
            bytes_accessed=B * C * itemsize + 3 * B * 4,
        ),
    )(inputs, picked)

    # Tiny masked mean in JAX: exclude ignore_index rows, divide by true count.
    # NOTE: if every row is ignored, count == 0 and the result is NaN — this
    # matches PyTorch's CrossEntropyLoss mean-reduction behavior.
    per_row = per_row[:, 0]
    valid = tgt0 != -100
    loss_sum = jnp.sum(jnp.where(valid, per_row, 0.0))
    count = jnp.sum(valid.astype(jnp.float32))
    return (loss_sum / count).astype(jnp.float32)


if __name__ == "__main__":
    # Deterministic small example consistent with the module's forward signature.
    batch, num_classes, window = 8, 16, 4
    key = jax.random.PRNGKey(0)
    k_logits, k_targets = jax.random.split(key)

    inputs = jax.random.normal(k_logits, (batch, num_classes), dtype=jnp.float32)
    targets = jax.random.randint(k_targets, (batch, window), 0, num_classes, dtype=jnp.int32)

    loss = jax.block_until_ready(act_cross_entropy_loss(inputs, targets))

    # Pure-JAX reference (log-softmax + NLL, mean reduction).
    tgt0 = targets[:, 0]
    logp = jax.nn.log_softmax(inputs, axis=-1)
    ref = -jnp.mean(logp[jnp.arange(batch), tgt0])
    assert jnp.allclose(loss, ref, rtol=1e-5, atol=1e-5), (loss, ref)

    # Second check: ragged batch tile (B=10, TB=8) + ragged class tile and
    # multi-tile online logsumexp over the class axis (C=300, TC=128).
    b2, c2, w2 = 10, 300, 3
    k1, k2 = jax.random.split(jax.random.PRNGKey(1))
    x2 = jax.random.normal(k1, (b2, c2), dtype=jnp.float32)
    t2 = jax.random.randint(k2, (b2, w2), 0, c2, dtype=jnp.int32)
    loss2 = jax.block_until_ready(act_cross_entropy_loss(x2, t2, tile_b=8, tile_c=128))
    logp2 = jax.nn.log_softmax(x2, axis=-1)
    ref2 = -jnp.mean(logp2[jnp.arange(b2), t2[:, 0]])
    assert jnp.allclose(loss2, ref2, rtol=1e-5, atol=1e-5), (loss2, ref2)

    # Third check: bf16 logits (native-dtype HBM stream, f32 math in-kernel).
    x3 = jax.random.normal(jax.random.PRNGKey(2), (b2, c2), dtype=jnp.bfloat16)
    loss3 = jax.block_until_ready(act_cross_entropy_loss(x3, t2, tile_b=8, tile_c=128))
    logp3 = jax.nn.log_softmax(x3.astype(jnp.float32), axis=-1)
    ref3 = -jnp.mean(logp3[jnp.arange(b2), t2[:, 0]])
    assert jnp.allclose(loss3, ref3, rtol=1e-3, atol=1e-3), (loss3, ref3)

    print("KERNEL_OK")
</pallas_src>

<mosaic_0001>
module attributes {stable_mosaic.version = 11 : i64} {
  func.func @_ce_kernel(%arg0: i32, %arg1: i32, %arg2: memref<8x128xf32, #tpu.memory_space<vmem>>, %arg3: memref<8x1xf32, #tpu.memory_space<vmem>>, %arg4: memref<8x1xf32, #tpu.memory_space<vmem>>, %arg5: memref<8x1xf32, #tpu.memory_space<vmem>>, %arg6: memref<8x1xf32, #tpu.memory_space<vmem>>) attributes {dimension_semantics = [#tpu.dimension_semantics<parallel>, #tpu.dimension_semantics<arbitrary>], iteration_bounds = array<i64: 1, 1>, scalar_prefetch = 0 : i64, scratch_operands = 2 : i64, tpu.core_type = #tpu.core_type<tc>, window_params = [{transform_indices = @transform_0, window_bounds = array<i64: 8, 128>}, {transform_indices = @transform_1, window_bounds = array<i64: 8, 1>}, {transform_indices = @transform_2, window_bounds = array<i64: 8, 1>}]} {
    %c0_i32 = arith.constant 0 : i32
    %0 = arith.cmpi eq, %arg1, %c0_i32 : i32
    %1 = arith.extui %0 : i1 to i32
    %c0_i32_0 = arith.constant 0 : i32
    %2 = arith.cmpi ne, %1, %c0_i32_0 : i32
    scf.if %2 {
      %cst_14 = arith.constant 0xFF800000 : f32
      %30 = vector.broadcast %cst_14 : f32 to vector<8x1xf32>
      %c0_15 = arith.constant 0 : index
      %c0_16 = arith.constant 0 : index
      %31 = vector.load %arg5[%c0_15, %c0_16] : memref<8x1xf32, #tpu.memory_space<vmem>>, vector<8x1xf32>
      tpu.vector_store %arg5[%c0_15, %c0_16], %30 {strides = array<i32>} : memref<8x1xf32, #tpu.memory_space<vmem>>, vector<8x1xf32>,
      %cst_17 = arith.constant 0.000000e+00 : f32
      %32 = vector.broadcast %cst_17 : f32 to vector<8x1xf32>
      %c0_18 = arith.constant 0 : index
      %c0_19 = arith.constant 0 : index
      %33 = vector.load %arg6[%c0_18, %c0_19] : memref<8x1xf32, #tpu.memory_space<vmem>>, vector<8x1xf32>
      tpu.vector_store %arg6[%c0_18, %c0_19], %32 {strides = array<i32>} : memref<8x1xf32, #tpu.memory_space<vmem>>, vector<8x1xf32>,
    } else {
    }
    %c0 = arith.constant 0 : index
    %c0_1 = arith.constant 0 : index
    %3 = vector.load %arg2[%c0, %c0_1] : memref<8x128xf32, #tpu.memory_space<vmem>>, vector<8x128xf32>
    %4 = tpu.iota {dimensions = array<i32: 1>} : vector<8x128xi32>
    %c128_i32 = arith.constant 128 : i32
    %5 = arith.muli %arg1, %c128_i32 : i32
    %c16_i32 = arith.constant 16 : i32
    %6 = arith.subi %c16_i32, %5 : i32
    %7 = vector.broadcast %6 : i32 to vector<8x128xi32>
    %8 = arith.cmpi slt, %4, %7 : vector<8x128xi32>
    %cst = arith.constant -1.000000e+30 : f32
    %9 = vector.broadcast %cst : f32 to vector<8x128xf32>
    %10 = arith.select %8, %3, %9 : vector<8x128xi1>, vector<8x128xf32>
    %c0_2 = arith.constant 0 : index
    %c0_3 = arith.constant 0 : index
    %11 = vector.load %arg5[%c0_2, %c0_3] : memref<8x1xf32, #tpu.memory_space<vmem>>, vector<8x1xf32>
    %cst_4 = arith.constant dense<0xFF800000> : vector<8xf32>
    %12 = vector.multi_reduction <maximumf>, %10, %cst_4 [1] : vector<8x128xf32> to vector<8xf32>
    %13 = vector.shape_cast %12 : vector<8xf32> to vector<8x1xf32>
    %14 = arith.maximumf %11, %13 : vector<8x1xf32>
    %15 = arith.subf %11, %14 : vector<8x1xf32>
    %16 = math.exp %15 : vector<8x1xf32>
    %c0_5 = arith.constant 0 : index
    %c0_6 = arith.constant 0 : index
    %17 = vector.load %arg6[%c0_5, %c0_6] : memref<8x1xf32, #tpu.memory_space<vmem>>, vector<8x1xf32>
    %18 = arith.mulf %16, %17 : vector<8x1xf32>
    %19 = vector.broadcast %14 : vector<8x1xf32> to vector<8x128xf32>
    %20 = arith.subf %10, %19 : vector<8x128xf32>
    %21 = math.exp %20 : vector<8x128xf32>
    %cst_7 = arith.constant dense<0.000000e+00> : vector<8xf32>
    %22 = vector.multi_reduction <add>, %21, %cst_7 [1] : vector<8x128xf32> to vector<8xf32>
    %23 = vector.shape_cast %22 : vector<8xf32> to vector<8x1xf32>
    %24 = arith.addf %18, %23 : vector<8x1xf32>
    %c0_8 = arith.constant 0 : index
    %c0_9 = arith.constant 0 : index
    %25 = vector.load %arg6[%c0_8, %c0_9] : memref<8x1xf32, #tpu.memory_space<vmem>>, vector<8x1xf32>
    tpu.vector_store %arg6[%c0_8, %c0_9], %24 {strides = array<i32>} : memref<8x1xf32, #tpu.memory_space<vmem>>, vector<8x1xf32>,
    %c0_10 = arith.constant 0 : index
    %c0_11 = arith.constant 0 : index
    %26 = vector.load %arg5[%c0_10, %c0_11] : memref<8x1xf32, #tpu.memory_space<vmem>>, vector<8x1xf32>
    tpu.vector_store %arg5[%c0_10, %c0_11], %14 {strides = array<i32>} : memref<8x1xf32, #tpu.memory_space<vmem>>, vector<8x1xf32>,
    %c0_i32_12 = arith.constant 0 : i32
    %27 = arith.cmpi eq, %arg1, %c0_i32_12 : i32
    %28 = arith.extui %27 : i1 to i32
    %c0_i32_13 = arith.constant 0 : i32
    %29 = arith.cmpi ne, %28, %c0_i32_13 : i32
    scf.if %29 {
      %c0_14 = arith.constant 0 : index
      %c0_15 = arith.constant 0 : index
      %30 = vector.load %arg5[%c0_14, %c0_15] : memref<8x1xf32, #tpu.memory_space<vmem>>, vector<8x1xf32>
      %c0_16 = arith.constant 0 : index
      %c0_17 = arith.constant 0 : index
      %31 = vector.load %arg6[%c0_16, %c0_17] : memref<8x1xf32, #tpu.memory_space<vmem>>, vector<8x1xf32>
      %32 = math.log %31 : vector<8x1xf32>
      %33 = arith.addf %30, %32 : vector<8x1xf32>
      %c0_18 = arith.constant 0 : index
      %c0_19 = arith.constant 0 : index
      %34 = vector.load %arg3[%c0_18, %c0_19] : memref<8x1xf32, #tpu.memory_space<vmem>>, vector<8x1xf32>
      %35 = arith.subf %33, %34 : vector<8x1xf32>
      %c0_20 = arith.constant 0 : index
      %c0_21 = arith.constant 0 : index
      %36 = vector.load %arg4[%c0_20, %c0_21] : memref<8x1xf32, #tpu.memory_space<vmem>>, vector<8x1xf32>
      tpu.vector_store %arg4[%c0_20, %c0_21], %35 {strides = array<i32>} : memref<8x1xf32, #tpu.memory_space<vmem>>, vector<8x1xf32>,
    } else {
    }
    return
  }
  func.func @transform_0(%arg0: i32, %arg1: i32) -> (i32, i32) {
    %c0_i32 = arith.constant 0 : i32
    return %arg0, %arg1 : i32, i32
  }
  func.func @transform_1(%arg0: i32, %arg1: i32) -> (i32, i32) {
    %c0_i32 = arith.constant 0 : i32
    %c0_i32_0 = arith.constant 0 : i32
    return %arg0, %c0_i32 : i32, i32
  }
  func.func @transform_2(%arg0: i32, %arg1: i32) -> (i32, i32) {
    %c0_i32 = arith.constant 0 : i32
    %c0_i32_0 = arith.constant 0 : i32
    return %arg0, %c0_i32 : i32, i32
  }
}

</mosaic_0001>

<bundles_post_ra>
// kernel: act_cross_entropy_loss.1
= control target key start
LH: loop header
LB: loop body
LE: loop exit
PB: predicated region body
PF: predicated region fallthrough
CT: control target
= control target key end

     0   :  { %v19_v0 = vlaneseq  ;;  %vm15_vm0 = vcmask 7168   ;;  %v74_v1 = vmov -inf   ;;  %v75_v5 = vmov 0   ;;  %s106_s0 = inlined_call_operand.vmem [shape: f32[8,16], index: 0, kind: input, shape index: {}]   ;;  %s107_s1 = inlined_call_operand.vmem [shape: f32[8,1], index: 1, kind: input, shape index: {}]   ;;  %s108_s2 = inlined_call_operand.vmem [shape: f32[8,1], index: 2, kind: output, shape index: {}]  }
   0x1   :  { %16 = vst.msk [vmem:[#allocation2] sm:$0xff] %vm15_vm0, %v74_v1  ;;  %v18_v2 = vld [vmem:[%s106_s0] sm:$0xff]  ;;  %67 = vset.pattern.permute.xlu0 %v75_v5  ;;  %v76_v6 = vmov 0.0  }
   0x2   :  { %v20_v3 = vand.u32 127, %v19_v0  ;;  %17 = vst.msk [vmem:[#allocation3] sm:$0xff] %vm15_vm0, %v76_v6  ;;  %v57_v25 = vld [vmem:[%s107_s1] sm:$0xff] }
   0x4   :  { %vm24_vm1 = vcmp.lt.s32.totalorder %v20_v3, 16 }
   0x5   :  { %v25_v4 = vsel %vm24_vm1, %v18_v2, -1e+30 }
   0x6   :  { %27 = vmax.xlane.f32.xlu0 %v25_v4 }
   0x8   :  { %v26_v7 = vld [vmem:[#allocation2] sm:$0xff] }
   0x9   :  { %v33_v17 = vld [vmem:[#allocation3] sm:$0xff] }
  0x93   :  { %v28_v8 = vpop.xlane.xlu0 %27 }
  0x94   :  { %v29_v9 = vmax.f32 %v26_v7, %v28_v8 }
  0x96   :  { %v30_v10 = vsub.f32 %v26_v7, %v29_v9  ;;  %48 = vst.msk [vmem:[#allocation2] sm:$0xff] %vm15_vm0, %v29_v9  ;;  %37 = vperm.xlu0 %67, %v29_v9  }
  0x98   :  { %v31_v15 = vmul.f32 1.442695, %v30_v10 }
  0x9d   :  { %v52_v24 = vld [vmem:[#allocation2] sm:$0xff] }
 0x115   :  { %v38_v11 = vpop.permute.xlu0 %37 }
 0x116   :  { %v40_v12 = vsub.f32 %v25_v4, %v38_v11 }
 0x118   :  { %v41_v13 = vmul.f32 1.442695, %v40_v12 }
 0x11a   :  { %68 = vpow2.f32 %v41_v13 }
 0x11b   :  { %70 = vpow2.f32 %v31_v15 }
 0x124   :  { %v69_v14 = vpop.eup %68 }
 0x125   :  { %43 = vadd.xlane.f32.xlu1 %v69_v14  ;;  %v71_v16 = vpop.eup %70 }
 0x126   :  { %v34_v18 = vmul.f32 %v71_v16, %v33_v17 }
 0x1b2   :  { %v44_v19 = vpop.xlane.xlu1 %43 }
 0x1b3   :  { %v45_v20 = vadd.f32 %v44_v19, %v34_v18 }
 0x1b5   :  { %47 = vst.msk [vmem:[#allocation3] sm:$0xff] %vm15_vm0, %v45_v20 }
 0x1bc   :  { %v53_v21 = vld [vmem:[#allocation3] sm:$0xff] }
 0x1bd   :  { %72 = vlog2.f32 %v53_v21 }
 0x1c7   :  { %v73_v22 = vpop.eup %72 }
 0x1c8   :  { %v55_v23 = vmul.f32 0.6931472, %v73_v22 }
 0x1ca   :  { %v56_v26 = vadd.f32 %v55_v23, %v52_v24 }
 0x1cc   :  { %v58_v27 = vsub.f32 %v56_v26, %v57_v25 }
 0x1ce   :  { %59 = vst.msk [vmem:[%s108_s2] sm:$0xff] %vm15_vm0, %v58_v27 }

</bundles_post_ra>
